<compile_context>
chip_gen: v5e
topology: v5e:2x2
jax: 0.10.0
libtpu: 0.0.40
codegen_flags: <defaults>
</compile_context>

<pallas_src>
import jax
import jax.numpy as jnp
from jax.experimental import pallas as pl
from jax.experimental.pallas import tpu as pltpu


# ----------------------------------------------------------------------------
# ada_hermite equivalent: build the (n_in, n_bases) Hermite function system
# from the two nonlinear parameters (dilation, translation).
# Forward only needs phi (dphi / ind are used by the backward pass only).
# ----------------------------------------------------------------------------
def build_hermite_phi(n_in, n_bases, params):
    dilation = params[0]
    translation = params[1]
    grid = jnp.arange(n_in, dtype=jnp.float32) - (n_in - 1) / 2.0
    t = dilation * (grid - translation * n_in / 2.0)
    w = jnp.exp(-0.5 * t * t)

    # Physicists' Hermite polynomials: H_0=1, H_1=2t, H_k = 2t H_{k-1} - 2(k-1) H_{k-2}
    Hs = [jnp.ones_like(t), 2.0 * t]
    for k in range(2, n_bases):
        Hs.append(2.0 * t * Hs[k - 1] - 2.0 * (k - 1) * Hs[k - 2])
    Hs = Hs[:n_bases]

    cols = []
    for H in Hs:
        col = H * w
        col = col / jnp.sqrt(jnp.sum(col * col) + 1e-12)  # discrete L2 normalization
        cols.append(col)
    phi = jnp.stack(cols, axis=1)  # (n_in, n_bases)
    return phi


# ----------------------------------------------------------------------------
# Pallas kernel: one lane-dense MXU matmul per row tile.
#   x_ref: (tm, lanes)     packed rows of x
#   w_ref: (lanes, lanes)  block-diagonal kron(I_pack, P) projection weight (f32)
# ----------------------------------------------------------------------------
def vp_proj_kernel(x_ref, w_ref, o_ref):
    o_ref[...] = jnp.dot(
        x_ref[...],
        w_ref[...],
        preferred_element_type=jnp.float32,
        precision=jax.lax.Precision.HIGHEST,
    ).astype(o_ref.dtype)


def _round_up(a, b):
    return ((a + b - 1) // b) * b


def vp_project(x, phi, phip, *, tm_packed=8192):
    """Orthogonal projection of x (N, C, L) onto the columnspace of phi (L, K)."""
    N, C, L = x.shape
    M = N * C
    f32 = jnp.float32
    highest = jax.lax.Precision.HIGHEST

    # ---- glue (f32): fuse the two matmuls into a single LxL projection matrix
    #      y = x @ phip^T @ phi^T  ==  x @ P,   P = (phi @ pinv(phi))^T
    P = jnp.matmul(phip.T.astype(f32), phi.T.astype(f32), precision=highest)  # (L, L)

    # ---- lane-dense repack: `pack` consecutive L-rows per 128-lane vreg row.
    # (If L does not divide 128 the fallback pack=1 keeps the block's last dim
    #  equal to the full array dim, which is still BlockSpec-legal.)
    pack = 128 // L if (L <= 128 and 128 % L == 0) else 1
    lanes = pack * L

    x2d = x.reshape(M, L)
    M_pack = _round_up(M, pack)
    if M_pack != M:  # tiny (< pack rows) remainder pad so rows group evenly
        x2d = jnp.pad(x2d, ((0, M_pack - M), (0, 0)))
    Mp = M_pack // pack
    xp = x2d.reshape(Mp, lanes)

    # Block-diagonal weight: each packed L-segment multiplies P independently.
    # Kept in f32 (casting to bf16 would quantize the projection matrix).
    W = jnp.kron(jnp.eye(pack, dtype=f32), P)  # (lanes, lanes)

    # ---- row-tile selection (dtype-aware sublane granularity) ----
    elem_bytes = jnp.dtype(x.dtype).itemsize
    sub = 32 // elem_bytes  # f32: 8, bf16: 16, int8/fp8: 32
    tm_packed = min(max(sub, (tm_packed // sub) * sub), 8192)
    if Mp <= sub:
        tm = Mp                                            # single full-extent block
    elif Mp <= tm_packed:
        tm = max(sub, _round_up(pl.cdiv(Mp, 2), sub))      # >= 2 steps for v7x megacore
    else:
        tm = tm_packed
    grid = (pl.cdiv(Mp, tm),)  # ragged last block is masked by Pallas; no wrapper pad

    cost = pl.CostEstimate(
        flops=2 * Mp * lanes * lanes,
        transcendentals=0,
        bytes_accessed=2 * Mp * lanes * elem_bytes + lanes * lanes * 4,
    )

    outp = pl.pallas_call(
        vp_proj_kernel,
        out_shape=jax.ShapeDtypeStruct((Mp, lanes), x.dtype),
        grid_spec=pltpu.PrefetchScalarGridSpec(
            num_scalar_prefetch=0,
            grid=grid,
            in_specs=[
                pl.BlockSpec((tm, lanes), lambda i: (i, 0)),     # x rows (streamed)
                pl.BlockSpec((lanes, lanes), lambda i: (0, 0)),  # weight (resident)
            ],
            out_specs=pl.BlockSpec((tm, lanes), lambda i: (i, 0)),
        ),
        compiler_params=pltpu.CompilerParams(
            dimension_semantics=("parallel",),
            vmem_limit_bytes=32 * 1024 * 1024,
        ),
        cost_estimate=cost,
    )(xp, W)

    y2d = outp.reshape(M_pack, L)
    if M_pack != M:
        y2d = y2d[:M]
    return y2d.reshape(N, C, L)


# ----------------------------------------------------------------------------
# vp_layer forward (glue + kernel)
# ----------------------------------------------------------------------------
def vp_layer_forward(x, weight, n_in, n_bases, *, tm_packed=8192):
    phi = build_hermite_phi(n_in, n_bases, weight)  # ada(params), forward part
    # TODO(synk): torch.linalg.pinv (SVD) has no Pallas equivalent; done in plain JAX.
    phip = jnp.linalg.pinv(phi)                     # (n_bases, n_in)
    return vp_project(x, phi, phip, tm_packed=tm_packed)


def _reference(x, weight, n_in, n_bases):
    """Plain-JAX forward of vpfun: y = x @ (pinv(phi)^T @ phi^T)."""
    phi = build_hermite_phi(n_in, n_bases, weight)
    phip = jnp.linalg.pinv(phi)
    P = jnp.matmul(phip.T, phi.T, precision=jax.lax.Precision.HIGHEST)
    N, C, L = x.shape
    y2d = jnp.matmul(x.reshape(N * C, L), P, precision=jax.lax.Precision.HIGHEST)
    return y2d.reshape(N, C, L)


if __name__ == "__main__":
    # Small shapes consistent with the module: x is (N, C, L=n_in)
    N, C = 2, 4
    n_in = 16
    n_bases = 8

    key = jax.random.PRNGKey(0)
    x = jax.random.normal(key, (N, C, n_in), dtype=jnp.float32)

    # Deterministic parameter init, as in vp_layer.__init__ (init=[0.1, 0.0])
    weight = jnp.array([0.1, 0.0], dtype=jnp.float32)

    y = jax.block_until_ready(vp_layer_forward(x, weight, n_in, n_bases))
    y_ref = _reference(x, weight, n_in, n_bases)
    assert y.shape == (N, C, n_in)
    assert jnp.allclose(y, y_ref, rtol=1e-3, atol=1e-4), float(
        jnp.max(jnp.abs(y - y_ref))
    )

    # Second check exercising the multi-step grid with a ragged last block.
    key2 = jax.random.PRNGKey(1)
    x2 = jax.random.normal(key2, (2, 68, n_in), dtype=jnp.float32)  # M=136 -> 17 packed rows
    y2 = jax.block_until_ready(vp_layer_forward(x2, weight, n_in, n_bases, tm_packed=8))
    y2_ref = _reference(x2, weight, n_in, n_bases)
    assert jnp.allclose(y2, y2_ref, rtol=1e-3, atol=1e-4), float(
        jnp.max(jnp.abs(y2 - y2_ref))
    )

    print("KERNEL_OK")
</pallas_src>

<mosaic_0001>
module attributes {stable_mosaic.version = 11 : i64} {
  func.func @vp_proj_kernel(%arg0: i32, %arg1: memref<1x128xf32, #tpu.memory_space<vmem>>, %arg2: memref<128x128xf32, #tpu.memory_space<vmem>>, %arg3: memref<1x128xf32, #tpu.memory_space<vmem>>) attributes {dimension_semantics = [#tpu.dimension_semantics<parallel>], iteration_bounds = array<i64: 1>, scalar_prefetch = 0 : i64, scratch_operands = 0 : i64, tpu.core_type = #tpu.core_type<tc>, window_params = [{transform_indices = @transform_0, window_bounds = array<i64: 1, 128>}, {pipeline_mode = #tpu.pipeline_mode<synchronous>, transform_indices = @transform_1, window_bounds = array<i64: 128, 128>}, {transform_indices = @transform_2, window_bounds = array<i64: 1, 128>}]} {
    %c0 = arith.constant 0 : index
    %c0_0 = arith.constant 0 : index
    %0 = vector.load %arg1[%c0, %c0_0] : memref<1x128xf32, #tpu.memory_space<vmem>>, vector<1x128xf32>
    %c0_1 = arith.constant 0 : index
    %c0_2 = arith.constant 0 : index
    %1 = vector.load %arg2[%c0_1, %c0_2] : memref<128x128xf32, #tpu.memory_space<vmem>>, vector<128x128xf32>
    %cst = arith.constant dense<0.000000e+00> : vector<1x128xf32>
    %2 = tpu.matmul %0, %1, %cst {dimension_numbers = #tpu.dot_dimension_numbers<[1], [0], [0], [1], [0, 0, 1, 1], [], []>, precision = #tpu.contract_precision<fp32>} : vector<1x128xf32>, vector<128x128xf32>, vector<1x128xf32> -> vector<1x128xf32>
    %c0_3 = arith.constant 0 : index
    %c0_4 = arith.constant 0 : index
    %3 = vector.load %arg3[%c0_3, %c0_4] : memref<1x128xf32, #tpu.memory_space<vmem>>, vector<1x128xf32>
    tpu.vector_store %arg3[%c0_3, %c0_4], %2 {strides = array<i32>} : memref<1x128xf32, #tpu.memory_space<vmem>>, vector<1x128xf32>,
    return
  }
  func.func @transform_0(%arg0: i32) -> (i32, i32) {
    %c0_i32 = arith.constant 0 : i32
    %c0_i32_0 = arith.constant 0 : i32
    return %arg0, %c0_i32 : i32, i32
  }
  func.func @transform_1(%arg0: i32) -> (i32, i32) {
    %c0_i32 = arith.constant 0 : i32
    %c0_i32_0 = arith.constant 0 : i32
    %c0_i32_1 = arith.constant 0 : i32
    return %c0_i32, %c0_i32_0 : i32, i32
  }
  func.func @transform_2(%arg0: i32) -> (i32, i32) {
    %c0_i32 = arith.constant 0 : i32
    %c0_i32_0 = arith.constant 0 : i32
    return %arg0, %c0_i32 : i32, i32
  }
}

</mosaic_0001>

<bundles_post_ra>
// kernel: tpu_custom_call.1
= control target key start
LH: loop header
LB: loop body
LE: loop exit
PB: predicated region body
PF: predicated region fallthrough
CT: control target
= control target key end

     0   :  { %7 = vsyncpa [#allocation3], 0  ;;  %s769_s0 = inlined_call_operand.hbm [shape: f32[1,128], index: 0, kind: input, shape index: {}]   ;;  %s770_s1 = inlined_call_operand.hbm [shape: f32[128,128], index: 1, kind: input, shape index: {}]   ;;  %s771_s2 = inlined_call_operand.hbm [shape: f32[1,128], index: 2, kind: output, shape index: {}]  }
   0x1   :  { %8 = vsyncpa [#allocation6], 0 }
   0x2   :  { %9 = vsyncpa [#allocation4], 0  ;;  %s15_s11 = sshll.u32 %s769_s0, 4  ;;  %s502_s12 = smov [#allocation2]   ;;  %s16_s11 = int_to_ptr.hbm [resolvable:$true] %s15_s11 }
   0x3   :  { %s17_s13 = sshll.u32 %s502_s12, 4  ;;  %s25_s16 = sshll.u32 %s770_s1, 4  ;;  %s18_s13 = int_to_ptr.vmem [resolvable:$true] %s17_s13  ;;  %s26_s16 = int_to_ptr.hbm [resolvable:$true] %s25_s16 }
   0x4   :  { %20 = dma.hbm_to_vmem [thread:$0]  %s16_s11, 16, %s18_s13, [#allocation3]  }
   0x5   :  { %s503_s17 = smov [#allocation5]   ;;  %s504_s19 = smov 128  }
   0x6   :  { %s27_s18 = sshll.u32 %s503_s17, 4  ;;  %s505_s20 = smov 8   ;;  %s28_s18 = int_to_ptr.vmem [resolvable:$true] %s27_s18 }
   0x7   :  { %33 = dma.hbm_to_vmem [thread:$0]  %s26_s16, 2048, %s28_s18, [#allocation6], %s504_s19, %s504_s19, %s505_s20  }
   0x8   :  { %496 = dma.done.wait [#allocation3], 16  }
   0x9   :  { %497 = vsyncadd [#allocation3], 4294967280 }
   0xa   :  { %498 = dma.done.wait [#allocation6], 2048  }
   0xb   :  { %499 = vsyncadd [#allocation6], 4294965248  ;;  %v58_v0 = vld [vmem:[#allocation5 + $0x78] sm:$0xff]  ;;  %v57_v1 = vld [vmem:[#allocation5 + $0x70] sm:$0xff]  ;;  %s506_s0 = smov [#allocation7]   ;;  %s408_s23 = sshll.u32 %s771_s2, 4  ;;  %s409_s23 = int_to_ptr.hbm [resolvable:$true] %s408_s23 }
   0xc   :  { %v56_v2 = vld [vmem:[#allocation5 + $0x68] sm:$0xff]  ;;  %v528_v3 = vand.u32 4294901760, %v58_v0  ;;  %v530_v4 = vand.u32 4294901760, %v57_v1  ;;  %v55_v6 = vld [vmem:[#allocation5 + $0x60] sm:$0xff]  ;;  %v54_v7 = vld [vmem:[#allocation5 + $0x58] sm:$0xff]  ;;  %s406_s1 = sshll.u32 %s506_s0, 4  ;;  %s407_s1 = int_to_ptr.vmem [resolvable:$true] %s406_s1 }
   0xd   :  { %v532_v5 = vand.u32 4294901760, %v56_v2  ;;  %v53_v8 = vld [vmem:[#allocation5 + $0x50] sm:$0xff]  ;;  %v534_v9 = vand.u32 4294901760, %v55_v6  ;;  %v536_v10 = vand.u32 4294901760, %v54_v7  ;;  %v52_v12 = vld [vmem:[#allocation5 + $0x48] sm:$0xff]  ;;  %v51_v13 = vld [vmem:[#allocation5 + $0x40] sm:$0xff] }
   0xe   :  { %v538_v11 = vand.u32 4294901760, %v53_v8  ;;  %60 = vmatpush.msra.mxu0 %v528_v3  ;;  %v542_v14 = vsub.f32 %v58_v0, %v528_v3  ;;  %v545_v15 = vsub.f32 %v57_v1, %v530_v4  ;;  %v550_v17 = vand.u32 4294901760, %v52_v12  ;;  %v50_v18 = vld [vmem:[#allocation5 + $0x38] sm:$0xff]  ;;  %256 = vmatpush.msra.mxu3 %v528_v3  ;;  %v49_v26 = vld [vmem:[#allocation5 + $0x30] sm:$0xff]  ;;  %v48_v36 = vld [vmem:[#allocation5 + $0x28] sm:$0xff] }
   0xf   :  { %v548_v16 = vsub.f32 %v56_v2, %v532_v5  ;;  %v554_v19 = vsub.f32 %v55_v6, %v534_v9  ;;  %v557_v20 = vsub.f32 %v54_v7, %v536_v10  ;;  %v566_v25 = vand.u32 4294901760, %v51_v13  ;;  %v47_v42 = vld [vmem:[#allocation5 + $0x20] sm:$0xff]  ;;  %v46_v47 = vld [vmem:[#allocation5 + $0x18] sm:$0xff]  ;;  %v45_v55 = vld [vmem:[#allocation5 + $0x10] sm:$0xff] }
  0x10   :  { %v560_v21 = vsub.f32 %v53_v8, %v538_v11  ;;  %62 = vmatpush.msra.mxu0 %v530_v4  ;;  %v102_v22 = vand.u32 4294901760, %v542_v14  ;;  %v108_v23 = vand.u32 4294901760, %v545_v15  ;;  %203 = vmatpush.msra.mxu2 %v542_v14  ;;  %v570_v28 = vand.u32 4294901760, %v50_v18  ;;  %v44_v60 = vld [vmem:[#allocation5 + $0x8] sm:$0xff]  ;;  %v43_v1 = vld [vmem:[#allocation5] sm:$0xff] }
  0x11   :  { %v114_v24 = vand.u32 4294901760, %v548_v16  ;;  %v120_v27 = vand.u32 4294901760, %v554_v19  ;;  %v573_v29 = vsub.f32 %v52_v12, %v550_v17  ;;  %258 = vmatpush.msra.mxu3 %v530_v4  ;;  %v126_v33 = vand.u32 4294901760, %v557_v20  ;;  %v42_v7 = vld [vmem:[#allocation2] sm:$0x1] }
  0x12   :  { %64 = vmatpush.msra.mxu0 %v532_v5  ;;  %v103_v30 = vsub.f32 %v542_v14, %v102_v22  ;;  %v109_v31 = vsub.f32 %v545_v15, %v108_v23  ;;  %206 = vmatpush.msra.mxu2 %v545_v15  ;;  %v132_v34 = vand.u32 4294901760, %v560_v21  ;;  %v589_v35 = vand.u32 4294901760, %v49_v26 }
  0x13   :  { %v115_v32 = vsub.f32 %v548_v16, %v114_v24  ;;  %260 = vmatpush.msra.mxu3 %v532_v5  ;;  %v121_v39 = vsub.f32 %v554_v19, %v120_v27  ;;  %v597_v40 = vsub.f32 %v51_v13, %v566_v25  ;;  %v138_v41 = vand.u32 4294901760, %v573_v29 }
  0x14   :  { %v104_v37 = vand.u32 4294901760, %v103_v30  ;;  %66 = vmatpush.msra.mxu0 %v534_v9  ;;  %v110_v38 = vand.u32 4294901760, %v109_v31  ;;  %209 = vmatpush.msra.mxu2 %v548_v16  ;;  %v127_v44 = vsub.f32 %v557_v20, %v126_v33  ;;  %v606_v45 = vand.u32 4294901760, %v48_v36 }
  0x15   :  { %262 = vmatpush.msra.mxu3 %v534_v9  ;;  %v116_v43 = vand.u32 4294901760, %v115_v32  ;;  %v609_v46 = vsub.f32 %v50_v18, %v570_v28  ;;  %v133_v48 = vsub.f32 %v560_v21, %v132_v34  ;;  %v122_v49 = vand.u32 4294901760, %v121_v39 }
  0x16   :  { %105 = vmatpush.msra.mxu1 %v104_v37  ;;  %68 = vmatpush.msra.mxu0 %v536_v10  ;;  %v144_v50 = vand.u32 4294901760, %v597_v40  ;;  %v618_v51 = vand.u32 4294901760, %v47_v42  ;;  %v621_v52 = vsub.f32 %v49_v26, %v589_v35  ;;  %v139_v53 = vsub.f32 %v573_v29, %v138_v41 }
  0x17   :  { %212 = vmatpush.msra.mxu2 %v554_v19  ;;  %264 = vmatpush.msra.mxu3 %v536_v10  ;;  %v626_v54 = vand.u32 4294901760, %v46_v47  ;;  %v128_v56 = vand.u32 4294901760, %v127_v44  ;;  %v150_v57 = vand.u32 4294901760, %v609_v46  ;;  %v633_v58 = vsub.f32 %v48_v36, %v606_v45 }
  0x18   :  { %111 = vmatpush.msra.mxu1 %v110_v38  ;;  %70 = vmatpush.msra.mxu0 %v538_v11  ;;  %v134_v59 = vand.u32 4294901760, %v133_v48  ;;  %v145_v61 = vsub.f32 %v597_v40, %v144_v50  ;;  %v156_v62 = vand.u32 4294901760, %v621_v52  ;;  %v642_v63 = vand.u32 4294901760, %v45_v55 }
  0x19   :  { %215 = vmatpush.msra.mxu2 %v557_v20  ;;  %266 = vmatpush.msra.mxu3 %v538_v11  ;;  %v645_v0 = vsub.f32 %v47_v42, %v618_v51  ;;  %v140_v2 = vand.u32 4294901760, %v139_v53  ;;  %v648_v6 = vsub.f32 %v46_v47, %v626_v54  ;;  %v151_v8 = vsub.f32 %v609_v46, %v150_v57 }
  0x1a   :  { %117 = vmatpush.msra.mxu1 %v116_v43  ;;  %72 = vmatpush.msra.mxu0 %v550_v17  ;;  %v162_v12 = vand.u32 4294901760, %v633_v58  ;;  %v657_v13 = vand.u32 4294901760, %v44_v60  ;;  %v659_v18 = vand.u32 4294901760, %v42_v7  ;;  %v661_v26 = vand.u32 4294901760, %v43_v1 }
  0x1b   :  { %218 = vmatpush.msra.mxu2 %v560_v21  ;;  %268 = vmatpush.msra.mxu3 %v550_v17  ;;  %v146_v30 = vand.u32 4294901760, %v145_v61  ;;  %v157_v31 = vsub.f32 %v621_v52, %v156_v62  ;;  %v168_v32 = vand.u32 4294901760, %v645_v0  ;;  %v671_v36 = vsub.f32 %v45_v55, %v642_v63 }
  0x1c   :  { %123 = vmatpush.msra.mxu1 %v122_v49  ;;  %74 = vmatpush.msra.mxu0 %v566_v25  ;;  %v174_v37 = vand.u32 4294901760, %v648_v6  ;;  %v152_v38 = vand.u32 4294901760, %v151_v8  ;;  %v163_v39 = vsub.f32 %v633_v58, %v162_v12  ;;  %v681_v42 = vsub.f32 %v44_v60, %v657_v13 }
  0x1d   :  { %221 = vmatpush.msra.mxu2 %v573_v29  ;;  %270 = vmatpush.msra.mxu3 %v566_v25  ;;  %v92_v43 = vsub.f32 %v42_v7, %v659_v18  ;;  %v158_v44 = vand.u32 4294901760, %v157_v31  ;;  %v169_v47 = vsub.f32 %v645_v0, %v168_v32  ;;  %v180_v48 = vand.u32 4294901760, %v671_v36 }
  0x1e   :  { %129 = vmatpush.msra.mxu1 %v128_v56  ;;  %76 = vmatpush.msra.mxu0 %v570_v28  ;;  %v692_v49 = vsub.f32 %v43_v1, %v661_v26  ;;  %v164_v53 = vand.u32 4294901760, %v163_v39  ;;  %v175_v55 = vsub.f32 %v648_v6, %v174_v37  ;;  %v186_v56 = vand.u32 4294901760, %v681_v42 }
  0x1f   :  { %224 = vmatpush.msra.mxu2 %v597_v40  ;;  %272 = vmatpush.msra.mxu3 %v570_v28  ;;  %v170_v60 = vand.u32 4294901760, %v169_v47  ;;  %v181_v61 = vsub.f32 %v671_v36, %v180_v48 }
  0x20   :  { %135 = vmatpush.msra.mxu1 %v134_v59  ;;  %78 = vmatpush.msra.mxu0 %v589_v35  ;;  %v93_v59 = vand.u32 4294901760, %v92_v43  ;;  %v192_v1 = vand.u32 4294901760, %v692_v49  ;;  %v187_v7 = vsub.f32 %v681_v42, %v186_v56 }
  0x21   :  { %227 = vmatpush.msra.mxu2 %v609_v46  ;;  %274 = vmatpush.msra.mxu3 %v589_v35 }
  0x22   :  { %141 = vmatpush.msra.mxu1 %v140_v2  ;;  %80 = vmatpush.msra.mxu0 %v606_v45  ;;  %v176_v2 = vand.u32 4294901760, %v175_v55  ;;  %v94_v8 = vsub.f32 %v92_v43, %v93_v59  ;;  %v193_v31 = vsub.f32 %v692_v49, %v192_v1 }
  0x23   :  { %230 = vmatpush.msra.mxu2 %v621_v52  ;;  %276 = vmatpush.msra.mxu3 %v606_v45 }
  0x24   :  { %147 = vmatpush.msra.mxu1 %v146_v30  ;;  %82 = vmatpush.msra.mxu0 %v618_v51  ;;  %v182_v30 = vand.u32 4294901760, %v181_v61  ;;  %v95_v39 = vand.u32 4294901760, %v94_v8 }
  0x25   :  { %233 = vmatpush.msra.mxu2 %v633_v58  ;;  %278 = vmatpush.msra.mxu3 %v618_v51 }
  0x26   :  { %153 = vmatpush.msra.mxu1 %v152_v38  ;;  %84 = vmatpush.msra.mxu0 %v626_v54  ;;  %v188_v38 = vand.u32 4294901760, %v187_v7 }
  0x27   :  { %236 = vmatpush.msra.mxu2 %v645_v0  ;;  %280 = vmatpush.msra.mxu3 %v626_v54 }
  0x28   :  { %159 = vmatpush.msra.mxu1 %v158_v44  ;;  %86 = vmatpush.msra.mxu0 %v642_v63  ;;  %v194_v44 = vand.u32 4294901760, %v193_v31 }
  0x29   :  { %239 = vmatpush.msra.mxu2 %v648_v6  ;;  %282 = vmatpush.msra.mxu3 %v642_v63 }
  0x2a   :  { %165 = vmatpush.msra.mxu1 %v164_v53  ;;  %88 = vmatpush.msra.mxu0 %v657_v13 }
  0x2b   :  { %242 = vmatpush.msra.mxu2 %v671_v36  ;;  %284 = vmatpush.msra.mxu3 %v657_v13 }
  0x2c   :  { %171 = vmatpush.msra.mxu1 %v170_v60  ;;  %90 = vmatpush.msra.mxu0 %v661_v26 }
  0x2d   :  { %245 = vmatpush.msra.mxu2 %v681_v42  ;;  %286 = vmatpush.msra.mxu3 %v661_v26 }
  0x2e   :  { %297 = vmatpush.msrb.mxu0 %v102_v22  ;;  %177 = vmatpush.msra.mxu1 %v176_v2 }
  0x2f   :  { %248 = vmatpush.msra.mxu2 %v692_v49  ;;  %290 = vmatmul.f32.vlgmr.msra.gmra.mxu3 %v93_v59 }
  0x30   :  { %301 = vmatpush.msrb.mxu0 %v108_v23  ;;  %183 = vmatpush.msra.mxu1 %v182_v30 }
  0x31   :  { %251 = vmatmul.f32.vlgmr.msra.gmra.mxu2 %v92_v43  ;;  %96 = vmatmul.f32.vlgmr.msra.gmra.mxu0 %v95_v39 }
  0x32   :  { %305 = vmatpush.msrb.mxu0 %v114_v24  ;;  %189 = vmatpush.msra.mxu1 %v188_v38 }
  0x34   :  { %309 = vmatpush.msrb.mxu0 %v120_v27  ;;  %195 = vmatpush.msra.mxu1 %v194_v44 }
  0x35   :  { %197 = vmatmul.f32.vlgmr.msra.gmra.mxu1 %v659_v18 }
  0x36   :  { %364 = vmatpush.msrb.mxu1 %v528_v3  ;;  %313 = vmatpush.msrb.mxu0 %v126_v33 }
  0x38   :  { %366 = vmatpush.msrb.mxu1 %v530_v4  ;;  %317 = vmatpush.msrb.mxu0 %v132_v34 }
  0x3a   :  { %368 = vmatpush.msrb.mxu1 %v532_v5  ;;  %321 = vmatpush.msrb.mxu0 %v138_v41 }
  0x3c   :  { %370 = vmatpush.msrb.mxu1 %v534_v9  ;;  %325 = vmatpush.msrb.mxu0 %v144_v50 }
  0x3e   :  { %372 = vmatpush.msrb.mxu1 %v536_v10  ;;  %329 = vmatpush.msrb.mxu0 %v150_v57 }
  0x40   :  { %374 = vmatpush.msrb.mxu1 %v538_v11  ;;  %333 = vmatpush.msrb.mxu0 %v156_v62 }
  0x42   :  { %376 = vmatpush.msrb.mxu1 %v550_v17  ;;  %337 = vmatpush.msrb.mxu0 %v162_v12 }
  0x44   :  { %378 = vmatpush.msrb.mxu1 %v566_v25  ;;  %341 = vmatpush.msrb.mxu0 %v168_v32 }
  0x46   :  { %380 = vmatpush.msrb.mxu1 %v570_v28  ;;  %345 = vmatpush.msrb.mxu0 %v174_v37 }
  0x48   :  { %382 = vmatpush.msrb.mxu1 %v589_v35  ;;  %349 = vmatpush.msrb.mxu0 %v180_v48 }
  0x4a   :  { %384 = vmatpush.msrb.mxu1 %v606_v45  ;;  %353 = vmatpush.msrb.mxu0 %v186_v56 }
  0x4c   :  { %386 = vmatpush.msrb.mxu1 %v618_v51  ;;  %357 = vmatpush.msrb.mxu0 %v192_v1 }
  0x4d   :  { %359 = vmatmul.f32.vlgmr.msrb.gmra.mxu0 %v659_v18 }
  0x4e   :  { %388 = vmatpush.msrb.mxu1 %v626_v54 }
  0x50   :  { %390 = vmatpush.msrb.mxu1 %v642_v63 }
  0x52   :  { %392 = vmatpush.msrb.mxu1 %v657_v13 }
  0x54   :  { %394 = vmatpush.msrb.mxu1 %v661_v26 }
  0x55   :  { %396 = vmatmul.f32.vlgmr.msrb.gmra.mxu1 %v659_v18 }
  0xae   :  { %v97_v4 = vpop.f32.mrf.mxu0 }
  0xb2   :  { %v198_v3 = vpop.f32.mrf.mxu1  ;;  %v291_v11 = vpop.f32.mrf.mxu3 }
  0xb3   :  { %v199_v5 = vadd.f32 %v198_v3, %v97_v4 }
  0xb4   :  { %v252_v9 = vpop.f32.mrf.mxu2 }
  0xb5   :  { %v253_v10 = vadd.f32 %v252_v9, %v199_v5 }
  0xb7   :  { %v292_v14 = vadd.f32 %v291_v11, %v253_v10 }
  0xca   :  { %v360_v15 = vpop.f32.mrf.mxu0 }
  0xcb   :  { %v361_v16 = vadd.f32 %v360_v15, %v292_v14 }
  0xd2   :  { %v397_v17 = vpop.f32.mrf.mxu1 }
  0xd3   :  { %v398_v19 = vadd.f32 %v397_v17, %v361_v16 }
  0xd5   :  { %400 = vst [vmem:[#allocation7] sm:$0x1] %v398_v19 }
  0xd6   :  { %411 = dma.vmem_to_hbm [thread:$0]  %s407_s1, 16, %s409_s23, [#allocation4]  }
  0xd7   :  { %500 = dma.done.wait [#allocation4], 16  }
  0xd8   :  { %501 = vsyncadd [#allocation4], 4294967280 }
  0xd9   :  { %416 = vsyncpa [#allocation3], 1 }
  0xda   :  { %417 = vsyncpa [#allocation6], 1 }
  0xdb   :  { %418 = vsyncpa [#allocation4], 1 }

</bundles_post_ra>
